<compile_context>
chip_gen: v5e
topology: v5e:2x2
jax: 0.10.0
libtpu: 0.0.40
codegen_flags: <defaults>
</compile_context>

<pallas_src>
import jax
import jax.numpy as jnp
from jax.experimental import pallas as pl
from jax.experimental.pallas import tpu as pltpu

EPS = 1e-5


def _make_kernel(c, n_window, out_pad):
    """Build the fused two-head decoder kernel (closes over static sizes)."""
    nw = n_window
    inv_c = 1.0 / c

    def kernel(obj_ref, glob_ref, w1o_ref, w1g_ref, lnp_ref, w2_ref, b2_ref,
               out_ref):
        # ---- fused first linear for BOTH heads -------------------------------
        # hidden cols [0:C] -> reg head, cols [C:2C] -> cls head (f32 accumulate)
        h = (jnp.dot(obj_ref[...], w1o_ref[...],
                     preferred_element_type=jnp.float32)
             + jnp.dot(glob_ref[...], w1g_ref[...],
                       preferred_element_type=jnp.float32)
             + lnp_ref[0:1, :])                       # packed bias row (f32)

        # ---- per-head LayerNorm (one-pass mean/var), gamma/beta, ReLU --------
        def _norm(hh):
            s1 = jnp.sum(hh, axis=-1, keepdims=True)
            s2 = jnp.sum(hh * hh, axis=-1, keepdims=True)
            mu = s1 * inv_c
            var = jnp.maximum(s2 * inv_c - mu * mu, 0.0)
            return (hh - mu) * jax.lax.rsqrt(var + EPS)

        hn = jnp.concatenate([_norm(h[:, :c]), _norm(h[:, c:])], axis=-1)
        hn = hn * lnp_ref[1:2, :] + lnp_ref[2:3, :]
        hrelu = jnp.maximum(hn, 0.0).astype(w2_ref.dtype)

        # ---- fused second linear: block-diagonal packed W2 -------------------
        # one lane-dense output: reg cols [0:2nw], cls cols [2nw:3nw], rest pad.
        y = (jnp.dot(hrelu, w2_ref[...], preferred_element_type=jnp.float32)
             + b2_ref[...])

        col = jax.lax.broadcasted_iota(jnp.int32, y.shape, 1)
        is_cls = jnp.logical_and(col >= 2 * nw, col < 3 * nw)
        out_ref[...] = jnp.where(is_cls, jax.nn.sigmoid(y), y)

    return kernel


def temporal_decoder_anchor(feature_global, feature_obj, params, n_window,
                            tile_n=256, compute_dtype=jnp.float32):
    """feature_global, feature_obj: [b, c, t]  ->  dict of offset / score.

    tile_n: rows per grid step (clamped to the padded problem size).  256 keeps
    the per-step VMEM footprint small even on v7x (64 MiB physical VMEM) while
    feeding the MXU full-height tiles.
    """
    b, c, t = feature_global.shape
    nw = n_window
    out_w = 3 * nw
    out_pad = ((out_w + 127) // 128) * 128            # lane-dense packed output

    # ---- activations: [b, c, t] -> [b*t, c]; no HBM concat of the two features
    obj = jnp.transpose(feature_obj, (0, 2, 1)).reshape(b * t, c)
    glob = jnp.transpose(feature_global, (0, 2, 1)).reshape(b * t, c)

    N = b * t
    tile_n = max(8, min(tile_n, ((N + 7) // 8) * 8))  # don't exceed problem size
    n_pad = pl.cdiv(N, tile_n) * tile_n
    if n_pad != N:                                    # masked-free final tile
        obj = jnp.pad(obj, ((0, n_pad - N), (0, 0)))
        glob = jnp.pad(glob, ((0, n_pad - N), (0, 0)))

    # ---- pack weights so both heads run through single matmuls ---------------
    f32 = jnp.float32
    w1 = jnp.concatenate([params["w1r"], params["w1c"]], axis=1)      # [2C, 2C]
    w1o, w1g = w1[:c], w1[c:]                                         # [C, 2C] each

    lnp = jnp.zeros((8, 2 * c), f32)                  # rows: bias / gamma / beta
    lnp = lnp.at[0].set(jnp.concatenate([params["b1r"], params["b1c"]], axis=1)[0])
    lnp = lnp.at[1].set(jnp.concatenate([params["g1r"], params["g1c"]], axis=1)[0])
    lnp = lnp.at[2].set(jnp.concatenate([params["be1r"], params["be1c"]], axis=1)[0])

    w2 = jnp.zeros((2 * c, out_pad), f32)             # block-diagonal packed W2
    w2 = w2.at[:c, :2 * nw].set(params["w2r"])
    w2 = w2.at[c:, 2 * nw:3 * nw].set(params["w2c"])

    b2 = jnp.zeros((1, out_pad), f32)
    b2 = b2.at[0, :2 * nw].set(params["b2r"][0])
    b2 = b2.at[0, 2 * nw:3 * nw].set(params["b2c"][0])

    # bf16 on v6e/v7x: ~2x MXU throughput + half the activation/weight DMA bytes.
    # Accumulation stays f32; LN / ReLU / sigmoid stay f32.
    cd = compute_dtype
    obj, glob = obj.astype(cd), glob.astype(cd)
    w1o, w1g, w2 = w1o.astype(cd), w1g.astype(cd), w2.astype(cd)

    kernel = _make_kernel(c, nw, out_pad)

    def const_spec(shape):
        return pl.BlockSpec(shape, lambda i: (0, 0))

    out = pl.pallas_call(
        kernel,
        grid=(pl.cdiv(n_pad, tile_n),),
        in_specs=[
            pl.BlockSpec((tile_n, c), lambda i: (i, 0)),     # obj rows
            pl.BlockSpec((tile_n, c), lambda i: (i, 0)),     # global rows
            const_spec((c, 2 * c)),                          # W1 top  (obj rows)
            const_spec((c, 2 * c)),                          # W1 bottom (global rows)
            const_spec((8, 2 * c)),                          # packed LN bias/gamma/beta
            const_spec((2 * c, out_pad)),                    # packed block-diag W2
            const_spec((1, out_pad)),                        # packed b2
        ],
        out_specs=pl.BlockSpec((tile_n, out_pad), lambda i: (i, 0)),
        out_shape=jax.ShapeDtypeStruct((n_pad, out_pad), jnp.float32),
        compiler_params=pltpu.CompilerParams(
            dimension_semantics=("parallel",)),
    )(obj, glob, w1o, w1g, lnp, w2, b2)

    out = out[:N]
    # offset columns are [window, coord] per row -> [b, t*n_window, 2]
    offset = out[:, :2 * nw].reshape(b, t * nw, 2)
    pred_score = out[:, 2 * nw:3 * nw].reshape(b, t * nw)
    return {"temporal_offset": offset, "temporal_score": pred_score}


def _reference(feature_global, feature_obj, params, n_window):
    """Pure-JAX reference (mirrors the PyTorch module, eval mode)."""
    b, c, t = feature_global.shape
    x = jnp.concatenate([feature_obj, feature_global], axis=1)
    x = jnp.transpose(x, (0, 2, 1)).reshape(b * t, 2 * c)

    def head(x, w1, b1, g1, be1, w2, b2):
        h = x @ w1 + b1
        mu = h.mean(-1, keepdims=True)
        var = ((h - mu) ** 2).mean(-1, keepdims=True)
        hn = (h - mu) / jnp.sqrt(var + EPS) * g1 + be1
        return jnp.maximum(hn, 0.0) @ w2 + b2

    off = head(x, params["w1r"], params["b1r"], params["g1r"],
               params["be1r"], params["w2r"], params["b2r"])
    score = jax.nn.sigmoid(head(x, params["w1c"], params["b1c"], params["g1c"],
                                params["be1c"], params["w2c"], params["b2c"]))
    return off.reshape(b, t * n_window, 2), score.reshape(b, t * n_window)


def init_params(key, model_dim, n_window):
    """Deterministic synthetic parameters (shapes match MLP(2C, C, out, 2))."""
    c = model_dim
    ks = jax.random.split(key, 4)
    return {
        # reg_head: Linear(2C,C)+LN, Linear(C, 2*n_window)
        "w1r": 0.05 * jax.random.normal(ks[0], (2 * c, c), jnp.float32),
        "b1r": jnp.zeros((1, c), jnp.float32),
        "g1r": jnp.ones((1, c), jnp.float32),
        "be1r": jnp.zeros((1, c), jnp.float32),
        "w2r": 0.05 * jax.random.normal(ks[1], (c, 2 * n_window), jnp.float32),
        "b2r": jnp.zeros((1, 2 * n_window), jnp.float32),
        # cls_head: Linear(2C,C)+LN, Linear(C, n_window)
        "w1c": 0.05 * jax.random.normal(ks[2], (2 * c, c), jnp.float32),
        "b1c": jnp.zeros((1, c), jnp.float32),
        "g1c": jnp.ones((1, c), jnp.float32),
        "be1c": jnp.zeros((1, c), jnp.float32),
        "w2c": 0.05 * jax.random.normal(ks[3], (c, n_window), jnp.float32),
        "b2c": jnp.zeros((1, n_window), jnp.float32),
    }


if __name__ == "__main__":
    # TODO(synk): dropout is train-time only; this kernel implements eval-mode (identity).
    key = jax.random.PRNGKey(0)
    b, model_dim, t = 2, 32, 8
    temporal_window_width = [1, 2, 4]
    n_window = len(temporal_window_width)

    k1, k2, k3 = jax.random.split(key, 3)
    feature_global = jax.random.normal(k1, (b, model_dim, t), jnp.float32)
    feature_obj = jax.random.normal(k2, (b, model_dim, t), jnp.float32)
    params = init_params(k3, model_dim, n_window)

    ref_off, ref_score = _reference(feature_global, feature_obj, params, n_window)

    # --- f32 path (tight check) ---
    out = temporal_decoder_anchor(feature_global, feature_obj, params, n_window)
    jax.block_until_ready(out)
    assert out["temporal_offset"].shape == (b, t * n_window, 2)
    assert out["temporal_score"].shape == (b, t * n_window)
    assert jnp.allclose(out["temporal_offset"], ref_off, atol=1e-4)
    assert jnp.allclose(out["temporal_score"], ref_score, atol=1e-4)

    # --- bf16 compute path (v6e/v7x MXU-native), loose check ---
    out_bf16 = temporal_decoder_anchor(feature_global, feature_obj, params,
                                       n_window, compute_dtype=jnp.bfloat16)
    jax.block_until_ready(out_bf16)
    assert jnp.allclose(out_bf16["temporal_offset"], ref_off, atol=5e-2, rtol=5e-2)
    assert jnp.allclose(out_bf16["temporal_score"], ref_score, atol=5e-2, rtol=5e-2)

    print("KERNEL_OK")
</pallas_src>

<mosaic_0001>
module attributes {stable_mosaic.version = 11 : i64} {
  func.func @kernel(%arg0: i32, %arg1: memref<16x32xf32, #tpu.memory_space<vmem>>, %arg2: memref<16x32xf32, #tpu.memory_space<vmem>>, %arg3: memref<32x64xf32, #tpu.memory_space<vmem>>, %arg4: memref<32x64xf32, #tpu.memory_space<vmem>>, %arg5: memref<8x64xf32, #tpu.memory_space<vmem>>, %arg6: memref<64x128xf32, #tpu.memory_space<vmem>>, %arg7: memref<1x128xf32, #tpu.memory_space<vmem>>, %arg8: memref<16x128xf32, #tpu.memory_space<vmem>>) attributes {dimension_semantics = [#tpu.dimension_semantics<parallel>], iteration_bounds = array<i64: 1>, scalar_prefetch = 0 : i64, scratch_operands = 0 : i64, tpu.core_type = #tpu.core_type<tc>, window_params = [{transform_indices = @transform_0, window_bounds = array<i64: 16, 32>}, {transform_indices = @transform_1, window_bounds = array<i64: 16, 32>}, {pipeline_mode = #tpu.pipeline_mode<synchronous>, transform_indices = @transform_2, window_bounds = array<i64: 32, 64>}, {pipeline_mode = #tpu.pipeline_mode<synchronous>, transform_indices = @transform_3, window_bounds = array<i64: 32, 64>}, {pipeline_mode = #tpu.pipeline_mode<synchronous>, transform_indices = @transform_4, window_bounds = array<i64: 8, 64>}, {pipeline_mode = #tpu.pipeline_mode<synchronous>, transform_indices = @transform_5, window_bounds = array<i64: 64, 128>}, {pipeline_mode = #tpu.pipeline_mode<synchronous>, transform_indices = @transform_6, window_bounds = array<i64: 1, 128>}, {transform_indices = @transform_7, window_bounds = array<i64: 16, 128>}]} {
    %c0 = arith.constant 0 : index
    %c0_0 = arith.constant 0 : index
    %0 = vector.load %arg1[%c0, %c0_0] : memref<16x32xf32, #tpu.memory_space<vmem>>, vector<16x32xf32>
    %c0_1 = arith.constant 0 : index
    %c0_2 = arith.constant 0 : index
    %1 = vector.load %arg3[%c0_1, %c0_2] : memref<32x64xf32, #tpu.memory_space<vmem>>, vector<32x64xf32>
    %cst = arith.constant dense<0.000000e+00> : vector<16x64xf32>
    %2 = tpu.matmul %0, %1, %cst {dimension_numbers = #tpu.dot_dimension_numbers<[1], [0], [0], [1], [0, 0, 1, 1], [], []>} : vector<16x32xf32>, vector<32x64xf32>, vector<16x64xf32> -> vector<16x64xf32>
    %c0_3 = arith.constant 0 : index
    %c0_4 = arith.constant 0 : index
    %3 = vector.load %arg2[%c0_3, %c0_4] : memref<16x32xf32, #tpu.memory_space<vmem>>, vector<16x32xf32>
    %c0_5 = arith.constant 0 : index
    %c0_6 = arith.constant 0 : index
    %4 = vector.load %arg4[%c0_5, %c0_6] : memref<32x64xf32, #tpu.memory_space<vmem>>, vector<32x64xf32>
    %cst_7 = arith.constant dense<0.000000e+00> : vector<16x64xf32>
    %5 = tpu.matmul %3, %4, %cst_7 {dimension_numbers = #tpu.dot_dimension_numbers<[1], [0], [0], [1], [0, 0, 1, 1], [], []>} : vector<16x32xf32>, vector<32x64xf32>, vector<16x64xf32> -> vector<16x64xf32>
    %6 = arith.addf %2, %5 : vector<16x64xf32>
    %c0_8 = arith.constant 0 : index
    %c0_9 = arith.constant 0 : index
    %7 = vector.load %arg5[%c0_8, %c0_9] : memref<8x64xf32, #tpu.memory_space<vmem>>, vector<1x64xf32>
    %8 = vector.broadcast %7 : vector<1x64xf32> to vector<16x64xf32>
    %9 = arith.addf %6, %8 : vector<16x64xf32>
    %10 = vector.extract_strided_slice %9 {offsets = [0, 0], sizes = [16, 32], strides = [1, 1]} : vector<16x64xf32> to vector<16x32xf32>
    %cst_10 = arith.constant dense<0.000000e+00> : vector<16xf32>
    %11 = vector.multi_reduction <add>, %10, %cst_10 [1] : vector<16x32xf32> to vector<16xf32>
    %12 = vector.shape_cast %11 : vector<16xf32> to vector<16x1xf32>
    %13 = arith.mulf %10, %10 : vector<16x32xf32>
    %cst_11 = arith.constant dense<0.000000e+00> : vector<16xf32>
    %14 = vector.multi_reduction <add>, %13, %cst_11 [1] : vector<16x32xf32> to vector<16xf32>
    %15 = vector.shape_cast %14 : vector<16xf32> to vector<16x1xf32>
    %cst_12 = arith.constant 3.125000e-02 : f32
    %16 = vector.broadcast %cst_12 : f32 to vector<16x1xf32>
    %17 = arith.mulf %12, %16 : vector<16x1xf32>
    %cst_13 = arith.constant 3.125000e-02 : f32
    %18 = vector.broadcast %cst_13 : f32 to vector<16x1xf32>
    %19 = arith.mulf %15, %18 : vector<16x1xf32>
    %20 = arith.mulf %17, %17 : vector<16x1xf32>
    %21 = arith.subf %19, %20 : vector<16x1xf32>
    %cst_14 = arith.constant 0.000000e+00 : f32
    %22 = vector.broadcast %cst_14 : f32 to vector<16x1xf32>
    %23 = arith.maximumf %21, %22 : vector<16x1xf32>
    %24 = vector.broadcast %17 : vector<16x1xf32> to vector<16x32xf32>
    %25 = arith.subf %10, %24 : vector<16x32xf32>
    %cst_15 = arith.constant 9.99999974E-6 : f32
    %26 = vector.broadcast %cst_15 : f32 to vector<16x1xf32>
    %27 = arith.addf %23, %26 : vector<16x1xf32>
    %28 = math.rsqrt %27 : vector<16x1xf32>
    %29 = vector.broadcast %28 : vector<16x1xf32> to vector<16x32xf32>
    %30 = arith.mulf %25, %29 : vector<16x32xf32>
    %31 = vector.extract_strided_slice %9 {offsets = [0, 32], sizes = [16, 32], strides = [1, 1]} : vector<16x64xf32> to vector<16x32xf32>
    %cst_16 = arith.constant dense<0.000000e+00> : vector<16xf32>
    %32 = vector.multi_reduction <add>, %31, %cst_16 [1] : vector<16x32xf32> to vector<16xf32>
    %33 = vector.shape_cast %32 : vector<16xf32> to vector<16x1xf32>
    %34 = arith.mulf %31, %31 : vector<16x32xf32>
    %cst_17 = arith.constant dense<0.000000e+00> : vector<16xf32>
    %35 = vector.multi_reduction <add>, %34, %cst_17 [1] : vector<16x32xf32> to vector<16xf32>
    %36 = vector.shape_cast %35 : vector<16xf32> to vector<16x1xf32>
    %cst_18 = arith.constant 3.125000e-02 : f32
    %37 = vector.broadcast %cst_18 : f32 to vector<16x1xf32>
    %38 = arith.mulf %33, %37 : vector<16x1xf32>
    %cst_19 = arith.constant 3.125000e-02 : f32
    %39 = vector.broadcast %cst_19 : f32 to vector<16x1xf32>
    %40 = arith.mulf %36, %39 : vector<16x1xf32>
    %41 = arith.mulf %38, %38 : vector<16x1xf32>
    %42 = arith.subf %40, %41 : vector<16x1xf32>
    %cst_20 = arith.constant 0.000000e+00 : f32
    %43 = vector.broadcast %cst_20 : f32 to vector<16x1xf32>
    %44 = arith.maximumf %42, %43 : vector<16x1xf32>
    %45 = vector.broadcast %38 : vector<16x1xf32> to vector<16x32xf32>
    %46 = arith.subf %31, %45 : vector<16x32xf32>
    %cst_21 = arith.constant 9.99999974E-6 : f32
    %47 = vector.broadcast %cst_21 : f32 to vector<16x1xf32>
    %48 = arith.addf %44, %47 : vector<16x1xf32>
    %49 = math.rsqrt %48 : vector<16x1xf32>
    %50 = vector.broadcast %49 : vector<16x1xf32> to vector<16x32xf32>
    %51 = arith.mulf %46, %50 : vector<16x32xf32>
    %52 = tpu.concatenate %30, %51 in 1 : vector<16x32xf32>, vector<16x32xf32> -> vector<16x64xf32>
    %c1 = arith.constant 1 : index
    %c0_22 = arith.constant 0 : index
    %53 = vector.load %arg5[%c1, %c0_22] : memref<8x64xf32, #tpu.memory_space<vmem>>, vector<1x64xf32>
    %54 = vector.broadcast %53 : vector<1x64xf32> to vector<16x64xf32>
    %55 = arith.mulf %52, %54 : vector<16x64xf32>
    %c2 = arith.constant 2 : index
    %c0_23 = arith.constant 0 : index
    %56 = vector.load %arg5[%c2, %c0_23] : memref<8x64xf32, #tpu.memory_space<vmem>>, vector<1x64xf32>
    %57 = vector.broadcast %56 : vector<1x64xf32> to vector<16x64xf32>
    %58 = arith.addf %55, %57 : vector<16x64xf32>
    %cst_24 = arith.constant 0.000000e+00 : f32
    %59 = vector.broadcast %cst_24 : f32 to vector<16x64xf32>
    %60 = arith.maximumf %58, %59 : vector<16x64xf32>
    %c0_25 = arith.constant 0 : index
    %c0_26 = arith.constant 0 : index
    %61 = vector.load %arg6[%c0_25, %c0_26] : memref<64x128xf32, #tpu.memory_space<vmem>>, vector<64x128xf32>
    %cst_27 = arith.constant dense<0.000000e+00> : vector<16x128xf32>
    %62 = tpu.matmul %60, %61, %cst_27 {dimension_numbers = #tpu.dot_dimension_numbers<[1], [0], [0], [1], [0, 0, 1, 1], [], []>} : vector<16x64xf32>, vector<64x128xf32>, vector<16x128xf32> -> vector<16x128xf32>
    %c0_28 = arith.constant 0 : index
    %c0_29 = arith.constant 0 : index
    %63 = vector.load %arg7[%c0_28, %c0_29] : memref<1x128xf32, #tpu.memory_space<vmem>>, vector<1x128xf32>
    %64 = vector.broadcast %63 : vector<1x128xf32> to vector<16x128xf32>
    %65 = arith.addf %62, %64 : vector<16x128xf32>
    %66 = tpu.iota {dimensions = array<i32: 1>} : vector<16x128xi32>
    %c6_i32 = arith.constant 6 : i32
    %67 = vector.broadcast %c6_i32 : i32 to vector<16x128xi32>
    %68 = arith.cmpi sge, %66, %67 : vector<16x128xi32>
    %c9_i32 = arith.constant 9 : i32
    %69 = vector.broadcast %c9_i32 : i32 to vector<16x128xi32>
    %70 = arith.cmpi slt, %66, %69 : vector<16x128xi32>
    %71 = arith.andi %68, %70 : vector<16x128xi1>
    %72 = arith.negf %65 : vector<16x128xf32>
    %73 = math.exp %72 : vector<16x128xf32>
    %cst_30 = arith.constant 1.000000e+00 : f32
    %74 = vector.broadcast %cst_30 : f32 to vector<16x128xf32>
    %75 = arith.addf %74, %73 : vector<16x128xf32>
    %76 = arith.divf %74, %75 : vector<16x128xf32>
    %77 = arith.select %71, %76, %65 : vector<16x128xi1>, vector<16x128xf32>
    %c0_31 = arith.constant 0 : index
    %c0_32 = arith.constant 0 : index
    %78 = vector.load %arg8[%c0_31, %c0_32] : memref<16x128xf32, #tpu.memory_space<vmem>>, vector<16x128xf32>
    tpu.vector_store %arg8[%c0_31, %c0_32], %77 {strides = array<i32>} : memref<16x128xf32, #tpu.memory_space<vmem>>, vector<16x128xf32>,
    return
  }
  func.func @transform_0(%arg0: i32) -> (i32, i32) {
    %c0_i32 = arith.constant 0 : i32
    %c0_i32_0 = arith.constant 0 : i32
    return %arg0, %c0_i32 : i32, i32
  }
  func.func @transform_1(%arg0: i32) -> (i32, i32) {
    %c0_i32 = arith.constant 0 : i32
    %c0_i32_0 = arith.constant 0 : i32
    return %arg0, %c0_i32 : i32, i32
  }
  func.func @transform_2(%arg0: i32) -> (i32, i32) {
    %c0_i32 = arith.constant 0 : i32
    %c0_i32_0 = arith.constant 0 : i32
    %c0_i32_1 = arith.constant 0 : i32
    return %c0_i32, %c0_i32_0 : i32, i32
  }
  func.func @transform_3(%arg0: i32) -> (i32, i32) {
    %c0_i32 = arith.constant 0 : i32
    %c0_i32_0 = arith.constant 0 : i32
    %c0_i32_1 = arith.constant 0 : i32
    return %c0_i32, %c0_i32_0 : i32, i32
  }
  func.func @transform_4(%arg0: i32) -> (i32, i32) {
    %c0_i32 = arith.constant 0 : i32
    %c0_i32_0 = arith.constant 0 : i32
    %c0_i32_1 = arith.constant 0 : i32
    return %c0_i32, %c0_i32_0 : i32, i32
  }
  func.func @transform_5(%arg0: i32) -> (i32, i32) {
    %c0_i32 = arith.constant 0 : i32
    %c0_i32_0 = arith.constant 0 : i32
    %c0_i32_1 = arith.constant 0 : i32
    return %c0_i32, %c0_i32_0 : i32, i32
  }
  func.func @transform_6(%arg0: i32) -> (i32, i32) {
    %c0_i32 = arith.constant 0 : i32
    %c0_i32_0 = arith.constant 0 : i32
    %c0_i32_1 = arith.constant 0 : i32
    return %c0_i32, %c0_i32_0 : i32, i32
  }
  func.func @transform_7(%arg0: i32) -> (i32, i32) {
    %c0_i32 = arith.constant 0 : i32
    %c0_i32_0 = arith.constant 0 : i32
    return %arg0, %c0_i32 : i32, i32
  }
}

</mosaic_0001>

<bundles_post_ra>
// kernel: tpu_custom_call.1
= control target key start
LH: loop header
LB: loop body
LE: loop exit
PB: predicated region body
PF: predicated region fallthrough
CT: control target
= control target key end

     0   :  { %12 = vsyncpa [#allocation3], 0  ;;  %s805_s0 = inlined_call_operand.hbm [shape: f32[16,32], index: 0, kind: input, shape index: {}]   ;;  %s806_s1 = inlined_call_operand.hbm [shape: f32[16,32], index: 1, kind: input, shape index: {}]   ;;  %s807_s2 = inlined_call_operand.hbm [shape: f32[32,64], index: 2, kind: input, shape index: {}]   ;;  %s808_s3 = inlined_call_operand.hbm [shape: f32[32,64], index: 3, kind: input, shape index: {}]   ;;  %s809_s4 = inlined_call_operand.hbm [shape: f32[8,64], index: 4, kind: input, shape index: {}]   ;;  %s810_s5 = inlined_call_operand.hbm [shape: f32[64,128], index: 5, kind: input, shape index: {}]   ;;  %s811_s6 = inlined_call_operand.vmem [shape: f32[1,128], index: 6, kind: input, shape index: {}]   ;;  %s812_s7 = inlined_call_operand.hbm [shape: f32[16,128], index: 7, kind: output, shape index: {}]  }
   0x1   :  { %13 = vsyncpa [#allocation6], 0 }
   0x2   :  { %14 = vsyncpa [#allocation9], 0 }
   0x3   :  { %15 = vsyncpa [#allocation12], 0 }
   0x4   :  { %16 = vsyncpa [#allocation4], 0  ;;  %s34_s26 = sshll.u32 %s806_s1, 4  ;;  %s655_s27 = smov [#allocation5]   ;;  %s35_s26 = int_to_ptr.hbm [resolvable:$true] %s34_s26 }
   0x5   :  { %s36_s28 = sshll.u32 %s655_s27, 4  ;;  %s60_s8 = sshll.u32 %s808_s3, 4  ;;  %s37_s28 = int_to_ptr.vmem [resolvable:$true] %s36_s28  ;;  %s61_s8 = int_to_ptr.hbm [resolvable:$true] %s60_s8 }
   0x6   :  { %s656_s9 = smov 128   ;;  %s657_s10 = smov 8  }
   0x7   :  { %42 = dma.hbm_to_vmem [thread:$0]  %s35_s26, 256, %s37_s28, [#allocation6], %s656_s9, %s656_s9, %s657_s10  }
   0x8   :  { %s658_s11 = smov [#allocation8]   ;;  %s21_s1 = sshll.u32 %s805_s0, 4  ;;  %s22_s1 = int_to_ptr.hbm [resolvable:$true] %s21_s1 }
   0x9   :  { %s62_s12 = sshll.u32 %s658_s11, 4  ;;  %s47_s16 = sshll.u32 %s807_s2, 4  ;;  %s63_s12 = int_to_ptr.vmem [resolvable:$true] %s62_s12  ;;  %s48_s16 = int_to_ptr.hbm [resolvable:$true] %s47_s16 }
   0xa   :  { %68 = dma.hbm_to_vmem [thread:$0]  %s61_s8, 512, %s63_s12, [#allocation9], %s656_s9, %s656_s9, %s657_s10  }
   0xb   :  { %s659_s17 = smov [#allocation2]   ;;  %s660_s19 = smov [#allocation7]  }
   0xc   :  { %s23_s18 = sshll.u32 %s659_s17, 4  ;;  %s49_s0 = sshll.u32 %s660_s19, 4  ;;  %s24_s18 = int_to_ptr.vmem [resolvable:$true] %s23_s18  ;;  %s50_s0 = int_to_ptr.vmem [resolvable:$true] %s49_s0 }
   0xd   :  { %29 = dma.hbm_to_vmem [thread:$0]  %s22_s1, 256, %s24_s18, [#allocation3], %s656_s9, %s656_s9, %s657_s10  }
   0xe   :  { %s74_s22 = sshll.u32 %s809_s4, 4  ;;  %s84_s24 = sshll.u32 %s810_s5, 4  ;;  %s75_s22 = int_to_ptr.hbm [resolvable:$true] %s74_s22  ;;  %s85_s24 = int_to_ptr.hbm [resolvable:$true] %s84_s24 }
   0xf   :  { %55 = dma.hbm_to_vmem [thread:$0]  %s48_s16, 512, %s50_s0, [#allocation6], %s656_s9, %s656_s9, %s657_s10  }
  0x10   :  { %s661_s25 = smov [#allocation10]   ;;  %s662_s27 = smov [#allocation11]  }
  0x11   :  { %s76_s26 = sshll.u32 %s661_s25, 4  ;;  %s86_s28 = sshll.u32 %s662_s27, 4  ;;  %s77_s26 = int_to_ptr.vmem [resolvable:$true] %s76_s26  ;;  %s87_s28 = int_to_ptr.vmem [resolvable:$true] %s86_s28 }
  0x12   :  { %79 = dma.hbm_to_vmem [thread:$0]  %s75_s22, 128, %s77_s26, [#allocation9]  }
  0x13   :  { %92 = dma.hbm_to_vmem [thread:$0]  %s85_s24, 1024, %s87_s28, [#allocation12], %s656_s9, %s656_s9, %s657_s10  }
  0x14   :  { %645 = dma.done.wait [#allocation3], 256  }
  0x15   :  { %646 = vsyncadd [#allocation3], 4294967040 }
  0x16   :  { %647 = dma.done.wait [#allocation6], 768  }
  0x17   :  { %648 = vsyncadd [#allocation6], 4294966528 }
  0x18   :  { %649 = dma.done.wait [#allocation9], 640  }
  0x19   :  { %650 = vsyncadd [#allocation9], 4294966656 }
  0x1a   :  { %651 = dma.done.wait [#allocation12], 1024  }
  0x1b   :  { %652 = vsyncadd [#allocation12], 4294966272  ;;  %v130_v0 = vld [vmem:[#allocation8 + $0x18] sm:$0xff]  ;;  %v129_v2 = vld [vmem:[#allocation8 + $0x10] sm:$0xff]  ;;  %vm131_vm0 = vcmask 261120   ;;  %s663_s4 = smov 96  }
  0x1c   :  { %v124_v1 = vld [vmem:[#allocation7 + $0x18] sm:$0xff]  ;;  %150 = vmatpush.msra.mxu0 %v130_v0  ;;  %v123_v3 = vld [vmem:[#allocation7 + $0x10] sm:$0xff]  ;;  %v128_v4 = vld [vmem:[#allocation8 + $0x8] sm:$0xff]  ;;  %vm332_vm12 = vcmask 523264   ;;  %s415_s12 = sshll.u32 %s812_s7, 4  ;;  %s416_s12 = int_to_ptr.hbm [resolvable:$true] %s415_s12 }
  0x1d   :  { %179 = vmatpush.msra.mxu1 %v124_v1  ;;  %v122_v5 = vld [vmem:[#allocation7 + $0x8] sm:$0xff]  ;;  %v127_v6 = vld [vmem:[#allocation8] sm:$0xff]  ;;  %v125_v8 = vld [vmem:[#allocation5] sm:$0xff] }
  0x1e   :  { %151 = vmatpush.msra.mxu0 %v129_v2  ;;  %v121_v7 = vld [vmem:[#allocation7] sm:$0xff]  ;;  %v126_v10 = vld [vmem:[#allocation5 + $0x8] sm:$0xff]  ;;  %v120_v11 = vld [vmem:[#allocation2 + $0x8] sm:$0xff] }
  0x1f   :  { %180 = vmatpush.msra.mxu1 %v123_v3  ;;  %v119_v9 = vld [vmem:[#allocation2] sm:$0xff]  ;;  %v326_v49 = vld [vmem:[#allocation11 + $0x30] sm:$0xff]  ;;  %v325_v51 = vld [vmem:[#allocation11 + $0x28] sm:$0xff] }
  0x20   :  { %152 = vmatpush.msra.mxu0 %v128_v4  ;;  %v457_v12 = vld [vmem:[#allocation10] ss:$0 sm:$0xff]  ;;  %v324_v52 = vld [vmem:[#allocation11 + $0x20] sm:$0xff]  ;;  %v322_v57 = vld [vmem:[#allocation11 + $0x10] sm:$0xff] }
  0x21   :  { %181 = vmatpush.msra.mxu1 %v122_v5  ;;  %v327_v46 = vld [vmem:[#allocation11 + $0x38] sm:$0xff]  ;;  %v321_v63 = vld [vmem:[#allocation11 + $0x8] sm:$0xff]  ;;  %v320_v1 = vld [vmem:[#allocation11] sm:$0xff] }
  0x22   :  { %153 = vmatpush.msra.mxu0 %v127_v6  ;;  %347 = vmatpush.msra.mxu2 %v327_v46  ;;  %v323_v54 = vld [vmem:[#allocation11 + $0x18] sm:$0xff] }
  0x23   :  { %182 = vmatpush.msra.mxu1 %v121_v7  ;;  %431 = vmatmul.msk.f32.vlgmr.msra.gmra.mxu0 %vm131_vm0, %v125_v8 }
  0x24   :  { %433 = vmatmul.msk.f32.vlgmr.msra.gmra.mxu1 %vm131_vm0, %v119_v9  ;;  %439 = vmatpush.msra.mxu3 %v327_v46 }
  0x25   :  { %348 = vmatpush.msra.mxu2 %v326_v49 }
  0x26   :  { %440 = vmatpush.msra.mxu3 %v326_v49 }
  0x27   :  { %349 = vmatpush.msra.mxu2 %v325_v51 }
  0x28   :  { %441 = vmatpush.msra.mxu3 %v325_v51 }
  0x29   :  { %350 = vmatpush.msra.mxu2 %v324_v52 }
  0x2a   :  { %442 = vmatpush.msra.mxu3 %v324_v52 }
  0x2b   :  { %432 = vmatmul.msk.f32.gmra.mxu0 %vm131_vm0, %v126_v10  ;;  %351 = vmatpush.msra.mxu2 %v323_v54 }
  0x2c   :  { %434 = vmatmul.msk.f32.gmra.mxu1 %vm131_vm0, %v120_v11  ;;  %443 = vmatpush.msra.mxu3 %v323_v54 }
  0x2d   :  { %352 = vmatpush.msra.mxu2 %v322_v57 }
  0x2e   :  { %444 = vmatpush.msra.mxu3 %v322_v57 }
  0x2f   :  { %353 = vmatpush.msra.mxu2 %v321_v63 }
  0x30   :  { %445 = vmatpush.msra.mxu3 %v321_v63 }
  0x31   :  { %354 = vmatpush.msra.mxu2 %v320_v1 }
  0x32   :  { %446 = vmatpush.msra.mxu3 %v320_v1 }
  0xa0   :  { %v155_v13 = vpop.f32.mrf.mxu0 }
  0xa1   :  { %v184_v14 = vpop.f32.mrf.mxu1 }
  0xa2   :  { %v185_v15 = vadd.f32 %v184_v14, %v155_v13 }
  0xa4   :  { %v742_v16 = vadd.f32 %v457_v12, %v185_v15 }
  0xa6   :  { %246 = vrot.lane.b32.xlu0 %v742_v16, %s663_s4  ;;  %v194_v17 = vsel %vm131_vm0, %v742_v16, 0.0  ;;  %v200_v18 = vmul.f32 %v742_v16, %v742_v16 }
  0xa7   :  { %195 = vadd.xlane.f32.xlu2 %v194_v17 }
  0xa8   :  { %260 = vrot.lane.b32.xlu1 %v200_v18, %s663_s4  ;;  %v158_v19 = vpop.f32.mrf.mxu0  ;;  %v202_v25 = vsel %vm131_vm0, %v200_v18, 0.0 }
  0xa9   :  { %v187_v20 = vpop.f32.mrf.mxu1 }
  0xaa   :  { %v188_v21 = vadd.f32 %v187_v20, %v158_v19 }
  0xac   :  { %v749_v22 = vadd.f32 %v457_v12, %v188_v21 }
  0xae   :  { %248 = vrot.lane.b32.xlu0 %v749_v22, %s663_s4  ;;  %v197_v23 = vsel %vm131_vm0, %v749_v22, 0.0  ;;  %v201_v24 = vmul.f32 %v749_v22, %v749_v22 }
  0xaf   :  { %198 = vadd.xlane.f32.xlu2 %v197_v23 }
  0xb0   :  { %262 = vrot.lane.b32.xlu1 %v201_v24, %s663_s4  ;;  %v205_v26 = vsel %vm131_vm0, %v201_v24, 0.0 }
  0xb7   :  { %203 = vadd.xlane.f32.xlu2 %v202_v25 }
  0xbf   :  { %206 = vadd.xlane.f32.xlu2 %v205_v26 }
 0x118   :  { %v247_v27 = vpop.permute.xlu0 %246 }
 0x119   :  { %v252_v28 = vsel %vm131_vm0, %v247_v27, 0.0 }
 0x11a   :  { %253 = vadd.xlane.f32.xlu0 %v252_v28  ;;  %v261_v29 = vpop.permute.xlu1 %260  ;;  %v196_v35 = vpop.xlane.xlu2 %195 }
 0x11b   :  { %v266_v30 = vsel %vm131_vm0, %v261_v29, 0.0  ;;  %v762_v38 = vmul.f32 0.03125, %v196_v35 }
 0x11c   :  { %267 = vadd.xlane.f32.xlu2 %v266_v30 }
 0x11d   :  { %v212_v40 = vmul.f32 %v762_v38, %v762_v38 }
 0x120   :  { %v249_v31 = vpop.permute.xlu0 %248 }
 0x121   :  { %v255_v32 = vsel %vm131_vm0, %v249_v31, 0.0  ;;  %v218_v31 = vsub.f32 %v742_v16, %v762_v38 }
 0x122   :  { %256 = vadd.xlane.f32.xlu1 %v255_v32  ;;  %v263_v33 = vpop.permute.xlu1 %262  ;;  %v199_v36 = vpop.xlane.xlu2 %198 }
 0x123   :  { %v269_v34 = vsel %vm131_vm0, %v263_v33, 0.0  ;;  %v766_v43 = vmul.f32 0.03125, %v199_v36  ;;  %v458_v36 = vld [vmem:[#allocation10 + $0x1] ss:$0 sm:$0xff] }
 0x124   :  { %270 = vadd.xlane.f32.xlu2 %v269_v34 }
 0x125   :  { %v213_v47 = vmul.f32 %v766_v43, %v766_v43  ;;  %v219_v49 = vsub.f32 %v749_v22, %v766_v43 }
 0x12a   :  { %v204_v37 = vpop.xlane.xlu2 %203 }
 0x12b   :  { %v210_v39 = vmul.f32 0.03125, %v204_v37 }
 0x12d   :  { %v214_v41 = vsub.f32 %v210_v39, %v212_v40 }
 0x12f   :  { %v216_v44 = vmax.f32 %v214_v41, 0.0  ;;  %v459_v41 = vld [vmem:[#allocation10 + $0x2] ss:$0 sm:$0xff] }
 0x131   :  { %v770_v48 = vadd.f32 1e-05, %v216_v44 }
 0x132   :  { %v207_v42 = vpop.xlane.xlu2 %206 }
 0x133   :  { %v211_v45 = vmul.f32 0.03125, %v207_v42  ;;  %461 = vrsqrt.f32 %v770_v48  ;;  %vm228_vm2 = vweird.f32 %v770_v48 }
 0x135   :  { %v215_v50 = vsub.f32 %v211_v45, %v213_v47 }
 0x137   :  { %v217_v53 = vmax.f32 %v215_v50, 0.0 }
 0x139   :  { %v773_v58 = vadd.f32 1e-05, %v217_v53  ;;  %v462_v60 = vpop.eup %461 }
 0x13a   :  { %v223_v2 = vmul.f32 %v462_v60, %v770_v48  ;;  %vm229_vm1 = vweird.f32 %v462_v60 }
 0x13b   :  { %463 = vrsqrt.f32 %v773_v58  ;;  %vm230_vm4 = vmor %vm228_vm2, %vm229_vm1  ;;  %vm238_vm8 = vweird.f32 %v773_v58 }
 0x13c   :  { %v224_v7 = vmul.f32 %v462_v60, %v223_v2  ;;  %v362_v2 = vlaneseq }
 0x13e   :  { %v225_v12 = vmul.f32 0.5, %v224_v7 }
 0x140   :  { %v226_v18 = vsub.f32 1.5, %v225_v12 }
 0x141   :  { %v464_v10 = vpop.eup %463 }
 0x142   :  { %v233_v14 = vmul.f32 %v464_v10, %v773_v58  ;;  %v227_v24 = vmul.f32 %v462_v60, %v226_v18  ;;  %vm239_vm7 = vweird.f32 %v464_v10 }
 0x143   :  { %vm240_vm10 = vmor %vm238_vm8, %vm239_vm7 }
 0x144   :  { %v234_v21 = vmul.f32 %v464_v10, %v233_v14  ;;  %v231_v29 = vsel %vm230_vm4, %v462_v60, %v227_v24 }
 0x145   :  { %v242_v39 = vmul.f32 %v231_v29, %v218_v31 }
 0x146   :  { %v235_v26 = vmul.f32 0.5, %v234_v21 }
 0x148   :  { %v236_v32 = vsub.f32 1.5, %v235_v26 }
 0x14a   :  { %v237_v42 = vmul.f32 %v464_v10, %v236_v32 }
 0x14c   :  { %v241_v47 = vsel %vm240_vm10, %v464_v10, %v237_v42 }
 0x14d   :  { %v243_v54 = vmul.f32 %v241_v47, %v219_v49 }
 0x18d   :  { %v254_v55 = vpop.xlane.xlu0 %253 }
 0x18e   :  { %v272_v56 = vmul.f32 0.03125, %v254_v55 }
 0x18f   :  { %v268_v59 = vpop.xlane.xlu2 %267 }
 0x190   :  { %v276_v61 = vmul.f32 %v272_v56, %v272_v56  ;;  %v274_v62 = vmul.f32 0.03125, %v268_v59  ;;  %v282_v33 = vsub.f32 %v742_v16, %v272_v56  ;;  %v460_v59 = vld [vmem:[%s811_s6] ss:$0 sm:$0xff]  ;;  %s664_s6 = smov [#allocation13]  }
 0x191   :  { %s413_s30 = sshll.u32 %s664_s6, 4  ;;  %s414_s30 = int_to_ptr.vmem [resolvable:$true] %s413_s30 }
 0x192   :  { %v278_v0 = vsub.f32 %v274_v62, %v276_v61 }
 0x194   :  { %v280_v3 = vmax.f32 %v278_v0, 0.0 }
 0x195   :  { %v257_v4 = vpop.xlane.xlu1 %256 }
 0x196   :  { %v284_v5 = vadd.f32 1e-05, %v280_v3  ;;  %v273_v6 = vmul.f32 0.03125, %v257_v4  ;;  %v363_v4 = vand.u32 127, %v362_v2 }
 0x197   :  { %v271_v8 = vpop.xlane.xlu2 %270 }
 0x198   :  { %465 = vrsqrt.f32 %v284_v5  ;;  %v277_v9 = vmul.f32 %v273_v6, %v273_v6  ;;  %v275_v11 = vmul.f32 0.03125, %v271_v8  ;;  %vm292_vm5 = vweird.f32 %v284_v5 }
 0x199   :  { %v283_v50 = vsub.f32 %v749_v22, %v273_v6  ;;  %vm364_vm14 = vcmp.ge.s32.totalorder %v363_v4, 6  ;;  %vm365_vm15 = vcmp.lt.s32.totalorder %v363_v4, 9 }
 0x19a   :  { %v279_v13 = vsub.f32 %v275_v11, %v277_v9  ;;  %vm791_vm1 = vmand %vm364_vm14, %vm365_vm15 }
 0x19c   :  { %v281_v15 = vmax.f32 %v279_v13, 0.0 }
 0x19e   :  { %v466_v17 = vpop.eup %465  ;;  %v285_v20 = vadd.f32 1e-05, %v281_v15 }
 0x19f   :  { %v287_v19 = vmul.f32 %v466_v17, %v284_v5  ;;  %vm293_vm3 = vweird.f32 %v466_v17 }
 0x1a0   :  { %467 = vrsqrt.f32 %v285_v20  ;;  %vm294_vm6 = vmor %vm292_vm5, %vm293_vm3  ;;  %vm302_vm11 = vweird.f32 %v285_v20 }
 0x1a1   :  { %v288_v23 = vmul.f32 %v466_v17, %v287_v19 }
 0x1a3   :  { %v289_v25 = vmul.f32 0.5, %v288_v23 }
 0x1a5   :  { %v290_v27 = vsub.f32 1.5, %v289_v25 }
 0x1a6   :  { %v468_v28 = vpop.eup %467 }
 0x1a7   :  { %v291_v30 = vmul.f32 %v466_v17, %v290_v27  ;;  %v297_v34 = vmul.f32 %v468_v28, %v285_v20  ;;  %vm303_vm9 = vweird.f32 %v468_v28 }
 0x1a8   :  { %vm304_vm13 = vmor %vm302_vm11, %vm303_vm9 }
 0x1a9   :  { %v295_v35 = vsel %vm294_vm6, %v466_v17, %v291_v30  ;;  %v298_v37 = vmul.f32 %v468_v28, %v297_v34 }
 0x1aa   :  { %v306_v40 = vmul.f32 %v295_v35, %v282_v33 }
 0x1ab   :  { %v299_v44 = vmul.f32 0.5, %v298_v37 }
 0x1ac   :  { %v308_v45 = vsel %vm131_vm0, %v242_v39, %v306_v40 }
 0x1ad   :  { %v312_v46 = vmul.f32 %v458_v36, %v308_v45  ;;  %v300_v38 = vsub.f32 1.5, %v299_v44 }
 0x1af   :  { %v316_v16 = vadd.f32 %v459_v41, %v312_v46  ;;  %v301_v48 = vmul.f32 %v468_v28, %v300_v38 }
 0x1b1   :  { %v318_v51 = vmax.f32 %v316_v16, 0.0  ;;  %v305_v52 = vsel %vm304_vm13, %v468_v28, %v301_v48 }
 0x1b2   :  { %v307_v53 = vmul.f32 %v305_v52, %v283_v50 }
 0x1b3   :  { %435 = vmatmul.msk.f32.vlgmr.msra.gmra.mxu2 %vm332_vm12, %v318_v51 }
 0x1b4   :  { %v309_v55 = vsel %vm131_vm0, %v243_v54, %v307_v53 }
 0x1b5   :  { %v313_v56 = vmul.f32 %v458_v36, %v309_v55 }
 0x1b7   :  { %v317_v57 = vadd.f32 %v459_v41, %v313_v56 }
 0x1b9   :  { %v319_v58 = vmax.f32 %v317_v57, 0.0 }
 0x1bb   :  { %436 = vmatmul.msk.f32.vlgmr.msra.gmra.mxu3 %vm332_vm12, %v319_v58 }
 0x236   :  { %v356_v60 = vpop.f32.mrf.mxu2 }
 0x237   :  { %v357_v43 = vadd.f32 %v460_v59, %v356_v60 }
 0x239   :  { %v437_v61 = vmul.f32 -1.442695, %v357_v43 }
 0x23b   :  { %469 = vpow2.f32 %v437_v61 }
 0x23e   :  { %v359_v22 = vpop.f32.mrf.mxu3 }
 0x23f   :  { %v360_v62 = vadd.f32 %v460_v59, %v359_v22 }
 0x241   :  { %v470_v63 = vpop.eup %469  ;;  %v438_v1 = vmul.f32 -1.442695, %v360_v62 }
 0x242   :  { %v373_v0 = vadd.f32 1.0, %v470_v63 }
 0x244   :  { %471 = vrcp.f32 %v373_v0  ;;  %v386_v9 = vand.u32 2147483648, %v373_v0  ;;  %v384_v11 = vand.u32 2147483647, %v373_v0  ;;  %vm380_vm2 = vweird.f32 %v373_v0 }
 0x245   :  { %473 = vpow2.f32 %v438_v1 }
 0x246   :  { %v387_v14 = vor.u32 1.1754944e-38, %v386_v9  ;;  %vm385_vm4 = vcmp.eq.f32.partialorder %v384_v11, 8.507059e+37 }
 0x24a   :  { %v472_v3 = vpop.eup %471 }
 0x24b   :  { %v474_v5 = vpop.eup %473  ;;  %v376_v6 = vmul.f32 %v472_v3, %v373_v0  ;;  %vm381_vm0 = vweird.f32 %v472_v3 }
 0x24c   :  { %v374_v7 = vadd.f32 1.0, %v474_v5  ;;  %vm382_vm3 = vmor %vm380_vm2, %vm381_vm0 }
 0x24d   :  { %v377_v8 = vsub.f32 1.0, %v376_v6 }
 0x24e   :  { %475 = vrcp.f32 %v374_v7  ;;  %v401_v23 = vand.u32 2147483648, %v374_v7  ;;  %v399_v25 = vand.u32 2147483647, %v374_v7  ;;  %vm395_vm6 = vweird.f32 %v374_v7 }
 0x24f   :  { %v378_v10 = vmul.f32 %v472_v3, %v377_v8 }
 0x250   :  { %v402_v27 = vor.u32 1.1754944e-38, %v401_v23  ;;  %vm400_vm8 = vcmp.eq.f32.partialorder %v399_v25, 8.507059e+37 }
 0x251   :  { %v379_v13 = vadd.f32 %v472_v3, %v378_v10 }
 0x253   :  { %v383_v15 = vsel %vm382_vm3, %v472_v3, %v379_v13 }
 0x254   :  { %v476_v17 = vpop.eup %475  ;;  %v388_v18 = vsel %vm385_vm4, %v387_v14, %v383_v15 }
 0x255   :  { %v405_v19 = vsel %vm791_vm1, %v388_v18, %v357_v43  ;;  %v391_v20 = vmul.f32 %v476_v17, %v374_v7  ;;  %vm396_vm5 = vweird.f32 %v476_v17 }
 0x256   :  { %407 = vst [vmem:[#allocation13] sm:$0xff] %v405_v19  ;;  %vm397_vm7 = vmor %vm395_vm6, %vm396_vm5 }
 0x257   :  { %v392_v21 = vsub.f32 1.0, %v391_v20 }
 0x259   :  { %v393_v24 = vmul.f32 %v476_v17, %v392_v21 }
 0x25b   :  { %v394_v26 = vadd.f32 %v476_v17, %v393_v24 }
 0x25d   :  { %v398_v28 = vsel %vm397_vm7, %v476_v17, %v394_v26 }
 0x25e   :  { %v403_v29 = vsel %vm400_vm8, %v402_v27, %v398_v28 }
 0x25f   :  { %v406_v30 = vsel %vm791_vm1, %v403_v29, %v360_v62 }
 0x260   :  { %408 = vst [vmem:[#allocation13 + $0x8] sm:$0xff] %v406_v30 }
 0x261   :  { %421 = dma.vmem_to_hbm [thread:$0]  %s414_s30, 256, %s416_s12, [#allocation4], %s656_s9, %s656_s9, %s657_s10  }
 0x262   :  { %653 = dma.done.wait [#allocation4], 256  }
 0x263   :  { %654 = vsyncadd [#allocation4], 4294967040 }
 0x264   :  { %426 = vsyncpa [#allocation3], 1 }
 0x265   :  { %427 = vsyncpa [#allocation6], 1 }
 0x266   :  { %428 = vsyncpa [#allocation9], 1 }
 0x267   :  { %429 = vsyncpa [#allocation12], 1 }
 0x268   :  { %430 = vsyncpa [#allocation4], 1 }

</bundles_post_ra>
